<compile_context>
chip_gen: v7x
topology: tpu7x:2x2x1
jax: 0.10.0
libtpu: 0.0.40
codegen_flags: <defaults>
</compile_context>

<pallas_src>
import jax
import jax.numpy as jnp
from jax.experimental import pallas as pl
from jax.experimental.pallas import tpu as pltpu


def _critic_kernel(x_ref, w1_ref, b1_ref, w2_ref, b2_ref, out_ref):
    # In-kernel bf16 cast of the f32 state tile (VPU), feeding the MXU matmul
    # with f32 accumulation.
    x = x_ref[...].astype(jnp.bfloat16)                       # (TB, D) bf16
    h = jnp.dot(x, w1_ref[...], preferred_element_type=jnp.float32)
    h = h + b1_ref[...]                                       # (TB, H) f32
    h = jnp.maximum(h, 0.0)                                   # ReLU on the VPU

    # fc3: (TB, H) -> (TB, 1) as VPU multiply + XLU lane reduction; keeps the
    # MXU free to overlap the next tile's fc1.
    v = jnp.sum(h * w2_ref[...], axis=-1, keepdims=True)      # (TB, 1) f32
    v = v + b2_ref[0, 0]                                      # scalar bias from SMEM
    out_ref[...] = v.astype(out_ref.dtype)


def _choose_batch_tile(B, block_b):
    """Biggest batch tile that (a) respects the VMEM budget (cap 16384),
    (b) leaves >= ~8 grid steps when B is large (pipelining + v7x megacore),
    (c) never drops below 1024 rows (step-overhead amortization),
    (d) is sublane-aligned unless it is the whole batch."""
    tb = min(int(block_b), 16384)
    if B <= tb:
        return B                      # whole batch in one tile (full-dim block is legal)
    while (B + tb - 1) // tb < 8 and tb > 1024:
        tb //= 2
    tb = max(8, (tb // 8) * 8)        # (8,128) alignment rule on the sublane dim
    return tb


def critic_forward(state, w1, b1, w2, b2, *, block_b=8192):
    """state: (B, D) f32; w1: (D, H); b1: (1, H) or (H,); w2: (H, 1) or (H,); b2: scalar-ish.

    Returns (B, 1) float32 state values (same math as Critic.forward)."""
    B, D = state.shape
    H = w1.shape[1]

    x = state.astype(jnp.float32)                     # stays f32; cast to bf16 in-kernel
    w1_bf = w1.astype(jnp.bfloat16)                   # tiny (D*H), wrapper cast is fine
    b1_row = jnp.reshape(b1, (1, H)).astype(jnp.float32)
    w2_row = jnp.reshape(w2, (1, H)).astype(jnp.float32)
    b2_sc = jnp.reshape(b2, (1, 1)).astype(jnp.float32)

    tb = _choose_batch_tile(B, block_b)
    grid = (pl.cdiv(B, tb),)

    return pl.pallas_call(
        _critic_kernel,
        out_shape=jax.ShapeDtypeStruct((B, 1), jnp.float32),
        grid=grid,
        in_specs=[
            pl.BlockSpec((tb, D), lambda i: (i, 0)),            # f32 x tiles stream
            pl.BlockSpec((D, H), lambda i: (0, 0)),             # w1 (bf16) resident
            pl.BlockSpec((1, H), lambda i: (0, 0)),             # b1 resident
            pl.BlockSpec((1, H), lambda i: (0, 0)),             # w2 row resident
            pl.BlockSpec(memory_space=pltpu.MemorySpace.SMEM),  # b2 scalar
        ],
        out_specs=pl.BlockSpec((tb, 1), lambda i: (i, 0)),
        compiler_params=pltpu.CompilerParams(
            dimension_semantics=("parallel",),
            vmem_limit_bytes=32 * 1024 * 1024,   # headroom for tb<=16384 on every gen
        ),
    )(x, w1_bf, b1_row, w2_row, b2_sc)


def init_critic_params(key, input_size, hidden=64):
    """Deterministic init matching PyTorch nn.Linear default (uniform +-1/sqrt(fan_in)).
    Weights stored as (in, out) so the kernel computes x @ W directly."""
    k1, k2, k3, k4 = jax.random.split(key, 4)
    bound1 = 1.0 / jnp.sqrt(jnp.float32(input_size))
    bound2 = 1.0 / jnp.sqrt(jnp.float32(hidden))
    w1 = jax.random.uniform(k1, (input_size, hidden), jnp.float32, -bound1, bound1)
    b1 = jax.random.uniform(k2, (1, hidden), jnp.float32, -bound1, bound1)
    w2 = jax.random.uniform(k3, (hidden, 1), jnp.float32, -bound2, bound2)
    b2 = jax.random.uniform(k4, (1, 1), jnp.float32, -bound2, bound2)
    return w1, b1, w2, b2


if __name__ == "__main__":
    key = jax.random.PRNGKey(0)
    k_params, k_state = jax.random.split(key)

    batch = 256       # small demo batch; multi-tile grid exercised via block_b=128
    input_size = 32   # "state" feature dimension
    hidden = 64

    w1, b1, w2, b2 = init_critic_params(k_params, input_size, hidden)
    state = jax.random.normal(k_state, (batch, input_size), jnp.float32)

    # Multi-tile grid (grid=(2,)) and single-tile (default block_b) paths.
    out_tiled = jax.block_until_ready(critic_forward(state, w1, b1, w2, b2, block_b=128))
    out_full = jax.block_until_ready(critic_forward(state, w1, b1, w2, b2))
    assert out_tiled.shape == (batch, 1)
    assert out_full.shape == (batch, 1)

    # Matched-precision reference (bf16 state/w1 into fc1, f32 accumulation) --
    # same math as the kernel.
    h_ref = jnp.dot(state.astype(jnp.bfloat16), w1.astype(jnp.bfloat16),
                    preferred_element_type=jnp.float32) + b1
    h_ref = jnp.maximum(h_ref, 0.0)
    ref = jnp.sum(h_ref * w2.reshape(1, hidden), axis=-1, keepdims=True) + b2.reshape(1, 1)
    assert jnp.allclose(out_tiled, ref, atol=1e-4, rtol=1e-4)
    assert jnp.allclose(out_full, ref, atol=1e-4, rtol=1e-4)

    # Loose check against the pure-f32 PyTorch-equivalent forward.
    ref_f32 = jnp.maximum(state @ w1 + b1, 0.0) @ w2.reshape(hidden, 1) + b2.reshape(1, 1)
    assert jnp.allclose(out_tiled, ref_f32, atol=5e-2, rtol=5e-2)

    print("KERNEL_OK")
</pallas_src>

<mosaic_0001>
module attributes {stable_mosaic.version = 11 : i64} {
  func.func @_critic_kernel(%arg0: i32, %arg1: memref<128x32xf32, #tpu.memory_space<vmem>>, %arg2: memref<32x64xbf16, #tpu.memory_space<vmem>>, %arg3: memref<1x64xf32, #tpu.memory_space<vmem>>, %arg4: memref<1x64xf32, #tpu.memory_space<vmem>>, %arg5: memref<1x1xf32, #tpu.memory_space<smem>>, %arg6: memref<128x1xf32, #tpu.memory_space<vmem>>) attributes {dimension_semantics = [#tpu.dimension_semantics<parallel>], iteration_bounds = array<i64: 2>, scalar_prefetch = 0 : i64, scratch_operands = 0 : i64, tpu.core_type = #tpu.core_type<tc>, window_params = [{transform_indices = @transform_0, window_bounds = array<i64: 128, 32>}, {pipeline_mode = #tpu.pipeline_mode<synchronous>, transform_indices = @transform_1, window_bounds = array<i64: 32, 64>}, {pipeline_mode = #tpu.pipeline_mode<synchronous>, transform_indices = @transform_2, window_bounds = array<i64: 1, 64>}, {pipeline_mode = #tpu.pipeline_mode<synchronous>, transform_indices = @transform_3, window_bounds = array<i64: 1, 64>}, {transform_indices = @transform_4, window_bounds = array<i64: 1, 1>}, {transform_indices = @transform_5, window_bounds = array<i64: 128, 1>}]} {
    %c0 = arith.constant 0 : index
    %c0_0 = arith.constant 0 : index
    %0 = vector.load %arg1[%c0, %c0_0] : memref<128x32xf32, #tpu.memory_space<vmem>>, vector<128x32xf32>
    %1 = arith.truncf %0 : vector<128x32xf32> to vector<128x32xbf16>
    %c0_1 = arith.constant 0 : index
    %c0_2 = arith.constant 0 : index
    %2 = vector.load %arg2[%c0_1, %c0_2] : memref<32x64xbf16, #tpu.memory_space<vmem>>, vector<32x64xbf16>
    %cst = arith.constant dense<0.000000e+00> : vector<128x64xf32>
    %3 = tpu.matmul %1, %2, %cst {dimension_numbers = #tpu.dot_dimension_numbers<[1], [0], [0], [1], [0, 0, 1, 1], [], []>} : vector<128x32xbf16>, vector<32x64xbf16>, vector<128x64xf32> -> vector<128x64xf32>
    %c0_3 = arith.constant 0 : index
    %c0_4 = arith.constant 0 : index
    %4 = vector.load %arg3[%c0_3, %c0_4] : memref<1x64xf32, #tpu.memory_space<vmem>>, vector<1x64xf32>
    %5 = vector.broadcast %4 : vector<1x64xf32> to vector<128x64xf32>
    %6 = arith.addf %3, %5 : vector<128x64xf32>
    %cst_5 = arith.constant 0.000000e+00 : f32
    %7 = vector.broadcast %cst_5 : f32 to vector<128x64xf32>
    %8 = arith.maximumf %6, %7 : vector<128x64xf32>
    %c0_6 = arith.constant 0 : index
    %c0_7 = arith.constant 0 : index
    %9 = vector.load %arg4[%c0_6, %c0_7] : memref<1x64xf32, #tpu.memory_space<vmem>>, vector<1x64xf32>
    %10 = vector.broadcast %9 : vector<1x64xf32> to vector<128x64xf32>
    %11 = arith.mulf %8, %10 : vector<128x64xf32>
    %cst_8 = arith.constant dense<0.000000e+00> : vector<128xf32>
    %12 = vector.multi_reduction <add>, %11, %cst_8 [1] : vector<128x64xf32> to vector<128xf32>
    %13 = vector.shape_cast %12 : vector<128xf32> to vector<128x1xf32>
    %c0_9 = arith.constant 0 : index
    %c0_10 = arith.constant 0 : index
    %14 = memref.load %arg5[%c0_9, %c0_10] : memref<1x1xf32, #tpu.memory_space<smem>>
    %15 = vector.broadcast %14 : f32 to vector<128x1xf32>
    %16 = arith.addf %13, %15 : vector<128x1xf32>
    %c0_11 = arith.constant 0 : index
    %c0_12 = arith.constant 0 : index
    %17 = vector.load %arg6[%c0_11, %c0_12] : memref<128x1xf32, #tpu.memory_space<vmem>>, vector<128x1xf32>
    tpu.vector_store %arg6[%c0_11, %c0_12], %16 {strides = array<i32>} : memref<128x1xf32, #tpu.memory_space<vmem>>, vector<128x1xf32>,
    return
  }
  func.func @transform_0(%arg0: i32) -> (i32, i32) {
    %c0_i32 = arith.constant 0 : i32
    %c0_i32_0 = arith.constant 0 : i32
    return %arg0, %c0_i32 : i32, i32
  }
  func.func @transform_1(%arg0: i32) -> (i32, i32) {
    %c0_i32 = arith.constant 0 : i32
    %c0_i32_0 = arith.constant 0 : i32
    %c0_i32_1 = arith.constant 0 : i32
    return %c0_i32, %c0_i32_0 : i32, i32
  }
  func.func @transform_2(%arg0: i32) -> (i32, i32) {
    %c0_i32 = arith.constant 0 : i32
    %c0_i32_0 = arith.constant 0 : i32
    %c0_i32_1 = arith.constant 0 : i32
    return %c0_i32, %c0_i32_0 : i32, i32
  }
  func.func @transform_3(%arg0: i32) -> (i32, i32) {
    %c0_i32 = arith.constant 0 : i32
    %c0_i32_0 = arith.constant 0 : i32
    %c0_i32_1 = arith.constant 0 : i32
    return %c0_i32, %c0_i32_0 : i32, i32
  }
  func.func @transform_4(%arg0: i32) -> (i32, i32) {
    %c0_i32 = arith.constant 0 : i32
    %c0_i32_0 = arith.constant 0 : i32
    %c0_i32_1 = arith.constant 0 : i32
    return %c0_i32, %c0_i32_0 : i32, i32
  }
  func.func @transform_5(%arg0: i32) -> (i32, i32) {
    %c0_i32 = arith.constant 0 : i32
    %c0_i32_0 = arith.constant 0 : i32
    return %arg0, %c0_i32 : i32, i32
  }
}

</mosaic_0001>

<bundles_post_ra>
// kernel: tpu_custom_call.1
= control target key start
LH: loop header
LB: loop body
LE: loop exit
PB: predicated region body
PF: predicated region fallthrough
CT: control target
= control target key end

     0   :  { %s686_s20 = smov 0   ;;  %s816_s0 = inlined_call_operand.vmem [shape: f32[256,32], index: 0, kind: input, shape index: {}]   ;;  %s817_s1 = inlined_call_operand.vmem [shape: bf16[32,64], index: 1, kind: input, shape index: {}]   ;;  %s818_s2 = inlined_call_operand.vmem [shape: f32[1,64], index: 2, kind: input, shape index: {}]   ;;  %s819_s3 = inlined_call_operand.vmem [shape: f32[1,64], index: 3, kind: input, shape index: {}]   ;;  %s820_s4 = inlined_call_operand.<no memory space> [shape: f32[1,1], index: 4, kind: input, shape index: {}]   ;;  %s821_s5 = inlined_call_operand.vmem [shape: f32[256,1], index: 5, kind: output, shape index: {}]  }
   0x1   :  { %10 = sst [smem:[#allocation2]] %s820_s4 }
   0x2 LB: > { %s578_s21 = sadd.s32 4294967295, %s651_s20   ;;  %p582_p0 = scmp.ge.s32.totalorder %s651_s20, 1  ;;  %s651_s20 = sphi %s686_s20, %s16_s20  }
   0x3   : > { %p189_p1 = scmp.lt.s32.totalorder %s651_s20, 3 }
   0x5   : > { %p190_p2 = pnand %p582_p0, %p189_p1 }
   0x6   : > { %v643_v0 = vld [vmem:[%s817_s1] sm:$0xff] (!%p190_p2)   ;;  %s583_s4 = sshll.u32 (!%p190_p2), %s578_s21, 4  ;;  %v644_v1 = vld [vmem:[%s817_s1 + $0x8] sm:$0xff] (!%p190_p2)   ;;  %vm277_vm0 = vcmask (!%p190_p2), 261120   ;;  %vm438_vm1 = vcmask (!%p190_p2), 523264   ;;  %s487_s9 = sld [smem:[#allocation2]] (!%p190_p2) }
   0x7   : > { %193 = sbr.rel (%p190_p2) target bundleno = 414 (0x19e), region = 40  ;;  %p218_p3 = scmp.lt.s32.totalorder (!%p190_p2), %s583_s4, 31  ;;  %611 = vmatprep.subr.bf16.mxu0 (!%p190_p2), %v643_v0  ;;  %631 = vmatprep.subr.bf16.mxu1 (!%p190_p2), %v643_v0  ;;  %v719_v26 = vld [vmem:[%s818_s2] ss:$0 sm:$0xff] (!%p190_p2)  ;;  %vm505_vm2 = vcmask (!%p190_p2), 7168  }
   0x8   : > { %612 = vmatpush3.bf16.msra.mxu0 (!%p190_p2), %v643_v0  ;;  %633 = vmatpush3.bf16.msra.mxu1 (!%p190_p2), %v643_v0  ;;  %v727_v35 = vld [vmem:[%s819_s3] ss:$0 sm:$0xff] (!%p190_p2) }
   0x9   : > { %613 = vmatprep.subr.bf16.mxu0 (!%p190_p2), %v644_v1  ;;  %632 = vmatprep.subr.bf16.mxu1 (!%p190_p2), %v644_v1 }
   0xc   : > { %614 = vmatpush3.bf16.msra.mxu0 (!%p190_p2), %v644_v1  ;;  %634 = vmatpush3.bf16.msra.mxu1 (!%p190_p2), %v644_v1 }
   0xe   : > { %s823_s4 = smov (!%p218_p3, %s583_s4), 31 }
   0xf   : > { %s584_s26 = sshll.u32 %s823_s4, 3 }
  0x10   : > { %s221_s29 = scalar_lea.vmem %s816_s0, %s584_s26  ;;  %s779_s12 = scalar_lea.vmem %s821_s5, %s584_s26 }
  0x11   : > { %v230_v2 = vld [vmem:[%s221_s29] sm:$0xff]  ;;  %v231_v3 = vld [vmem:[%s221_s29 + $0x8] sm:$0xff]  ;;  %v232_v7 = vld [vmem:[%s221_s29 + $0x10] sm:$0xff] }
  0x12   : > { %v238_v4 = vld [vmem:[%s221_s29 + $0x40] sm:$0xff]  ;;  %v246_v5 = vpack.c.bf16 %v231_v3, %v230_v2  ;;  %v239_v6 = vld [vmem:[%s221_s29 + $0x48] sm:$0xff]  ;;  %v233_v8 = vld [vmem:[%s221_s29 + $0x18] sm:$0xff] }
  0x13   : > { %v250_v9 = vpack.c.bf16 %v239_v6, %v238_v4  ;;  %v247_v10 = vpack.c.bf16 %v233_v8, %v232_v7  ;;  %v240_v11 = vld [vmem:[%s221_s29 + $0x50] sm:$0xff]  ;;  %v241_v12 = vld [vmem:[%s221_s29 + $0x58] sm:$0xff]  ;;  %v234_v13 = vld [vmem:[%s221_s29 + $0x20] sm:$0xff] }
  0x14   : > { %615 = vmatprep.mubr.msk.bf16.mxu0 %vm277_vm0, %v246_v5  ;;  %v251_v14 = vpack.c.bf16 %v241_v12, %v240_v11  ;;  %v235_v15 = vld [vmem:[%s221_s29 + $0x28] sm:$0xff]  ;;  %v242_v17 = vld [vmem:[%s221_s29 + $0x60] sm:$0xff]  ;;  %v236_v19 = vld [vmem:[%s221_s29 + $0x30] sm:$0xff] }
  0x15   : > { %623 = vmatprep.mubr.msk.bf16.mxu1 %vm277_vm0, %v250_v9  ;;  %616 = vmatmul.mubr.msk.bf16.vlgmr.msra.gmra.mrb[0].mxu0 %vm277_vm0, %v247_v10  ;;  %v248_v16 = vpack.c.bf16 %v235_v15, %v234_v13  ;;  %v243_v18 = vld [vmem:[%s221_s29 + $0x68] sm:$0xff]  ;;  %v237_v20 = vld [vmem:[%s221_s29 + $0x38] sm:$0xff]  ;;  %v244_v22 = vld [vmem:[%s221_s29 + $0x70] sm:$0xff] }
  0x16   : > { %624 = vmatmul.mubr.msk.bf16.vlgmr.msra.gmra.mrb[0].mxu1 %vm277_vm0, %v251_v14  ;;  %v252_v21 = vpack.c.bf16 %v243_v18, %v242_v17  ;;  %v245_v23 = vld [vmem:[%s221_s29 + $0x78] sm:$0xff]  ;;  %v249_v24 = vpack.c.bf16 %v237_v20, %v236_v19 }
  0x17   : > { %619 = vmatprep.mubr.msk.bf16.mxu0 %vm277_vm0, %v248_v16  ;;  %v253_v25 = vpack.c.bf16 %v245_v23, %v244_v22 }
  0x18   : > { %627 = vmatprep.mubr.msk.bf16.mxu1 %vm277_vm0, %v252_v21 }
  0x1d   : > { %620 = vmatmul.mubr.msk.bf16.gmra.mrb[4].mxu0 %vm277_vm0, %v249_v24 }
  0x1e   : > { %628 = vmatmul.mubr.msk.bf16.gmra.mrb[4].mxu1 %vm277_vm0, %v253_v25 }
  0xe8   : > { %v617_v27 = vpop.f32.mrb[0].mxu0 }
  0xe9   : > { %v345_v28 = vadd.f32 %v617_v27, %v719_v26  ;;  %v625_v29 = vpop.f32.mrb[0].mxu1  ;;  %v336_v30 = vpop.f32.mrb[1].mxu0 }
  0xea   : > { %v377_v31 = vadd.f32 %v625_v29, %v719_v26  ;;  %v337_v32 = vadd.f32 %v719_v26, %v336_v30  ;;  %v368_v33 = vpop.f32.mrb[1].mxu1  ;;  %v618_v34 = vpop.f32.mrb[2].mxu0 }
  0xeb   : > { %v401_v36 = vmax.f32 %v345_v28, 0.0  ;;  %v348_v37 = vadd.f32 %v618_v34, %v719_v26  ;;  %v626_v38 = vpop.f32.mrb[2].mxu1  ;;  %v339_v39 = vpop.f32.mrb[3].mxu0  ;;  %v369_v42 = vadd.f32 %v719_v26, %v368_v33 }
  0xec   : > { %v409_v40 = vmax.f32 %v377_v31, 0.0  ;;  %v399_v41 = vmax.f32 %v337_v32, 0.0  ;;  %v380_v43 = vadd.f32 %v626_v38, %v719_v26  ;;  %v371_v44 = vpop.f32.mrb[3].mxu1  ;;  %v340_v53 = vadd.f32 %v719_v26, %v339_v39 }
  0xed   : > { %v402_v45 = vmax.f32 %v348_v37, 0.0  ;;  %v424_v46 = vmul.f32 %v727_v35, %v401_v36  ;;  %v372_v49 = vadd.f32 %v719_v26, %v371_v44  ;;  %v407_v52 = vmax.f32 %v369_v42, 0.0 }
  0xee   : > { %v432_v47 = vmul.f32 %v727_v35, %v409_v40  ;;  %v410_v48 = vmax.f32 %v380_v43, 0.0  ;;  %v422_v56 = vmul.f32 %v727_v35, %v399_v41  ;;  %v400_v3 = vmax.f32 %v340_v53, 0.0 }
  0xef   : > { %v445_v50 = vsel %vm438_vm1, %v424_v46, 0.0  ;;  %v425_v51 = vmul.f32 %v727_v35, %v402_v45  ;;  %v408_v61 = vmax.f32 %v372_v49, 0.0  ;;  %v430_v6 = vmul.f32 %v727_v35, %v407_v52 }
  0xf0   : > { %v469_v54 = vsel %vm438_vm1, %v432_v47, 0.0  ;;  %446 = vadd.xlane.f32.xlu1 %v445_v50  ;;  %v621_v55 = vpop.f32.mrb[4].mxu0  ;;  %v433_v1 = vmul.f32 %v727_v35, %v410_v48  ;;  %v439_v5 = vsel %vm438_vm1, %v422_v56, 0.0  ;;  %v423_v15 = vmul.f32 %v727_v35, %v400_v3 }
  0xf1   : > { %470 = vadd.xlane.f32.xlu0 %v469_v54  ;;  %v352_v57 = vpop.f32.mrb[5].mxu0  ;;  %v629_v58 = vpop.f32.mrb[4].mxu1  ;;  %v448_v62 = vsel %vm438_vm1, %v425_v51, 0.0  ;;  %v361_v4 = vadd.f32 %v621_v55, %v719_v26  ;;  %v431_v11 = vmul.f32 %v727_v35, %v408_v61  ;;  %v463_v14 = vsel %vm438_vm1, %v430_v6, 0.0 }
  0xf2   : > { %v622_v59 = vpop.f32.mrb[6].mxu0  ;;  %v384_v60 = vpop.f32.mrb[5].mxu1  ;;  %v472_v10 = vsel %vm438_vm1, %v433_v1, 0.0  ;;  %v353_v13 = vadd.f32 %v719_v26, %v352_v57  ;;  %v442_v22 = vsel %vm438_vm1, %v423_v15, 0.0  ;;  %v393_v29 = vadd.f32 %v629_v58, %v719_v26 }
  0xf3   : > { %v364_v63 = vadd.f32 %v622_v59, %v719_v26  ;;  %v355_v0 = vpop.f32.mrb[7].mxu0  ;;  %v630_v2 = vpop.f32.mrb[6].mxu1  ;;  %v405_v12 = vmax.f32 %v361_v4, 0.0  ;;  %v466_v17 = vsel %vm438_vm1, %v431_v11, 0.0  ;;  %v385_v21 = vadd.f32 %v719_v26, %v384_v60 }
  0xf4   : > { %449 = vadd.xlane.f32.xlu1 %v448_v62  ;;  %v387_v7 = vpop.f32.mrb[7].mxu1  ;;  %v356_v9 = vadd.f32 %v719_v26, %v355_v0  ;;  %v403_v20 = vmax.f32 %v353_v13, 0.0  ;;  %v396_v24 = vadd.f32 %v630_v2, %v719_v26  ;;  %v413_v37 = vmax.f32 %v393_v29, 0.0 }
  0xf5   : > { %440 = vadd.xlane.f32.xlu0 %v439_v5  ;;  %v406_v8 = vmax.f32 %v364_v63, 0.0  ;;  %v388_v18 = vadd.f32 %v719_v26, %v387_v7  ;;  %v428_v23 = vmul.f32 %v727_v35, %v405_v12  ;;  %v411_v30 = vmax.f32 %v385_v21, 0.0 }
  0xf6   : > { %v404_v16 = vmax.f32 %v356_v9, 0.0  ;;  %v426_v32 = vmul.f32 %v727_v35, %v403_v20  ;;  %v414_v33 = vmax.f32 %v396_v24, 0.0  ;;  %v436_v42 = vmul.f32 %v727_v35, %v413_v37 }
  0xf7   : > { %v429_v19 = vmul.f32 %v727_v35, %v406_v8  ;;  %v412_v25 = vmax.f32 %v388_v18, 0.0  ;;  %v457_v31 = vsel %vm438_vm1, %v428_v23, 0.0  ;;  %v434_v39 = vmul.f32 %v727_v35, %v411_v30 }
  0xf8   : > { %473 = vadd.xlane.f32.xlu1 %v472_v10  ;;  %v427_v28 = vmul.f32 %v727_v35, %v404_v16  ;;  %v451_v38 = vsel %vm438_vm1, %v426_v32, 0.0  ;;  %v437_v40 = vmul.f32 %v727_v35, %v414_v33  ;;  %v481_v44 = vsel %vm438_vm1, %v436_v42, 0.0 }
  0xf9   : > { %464 = vadd.xlane.f32.xlu0 %v463_v14  ;;  %v460_v27 = vsel %vm438_vm1, %v429_v19, 0.0  ;;  %v435_v36 = vmul.f32 %v727_v35, %v412_v25  ;;  %v475_v41 = vsel %vm438_vm1, %v434_v39, 0.0  ;;  %v488_v45 = vstv %s487_s9 }
  0xfa   : > { %v454_v34 = vsel %vm438_vm1, %v427_v28, 0.0  ;;  %v484_v43 = vsel %vm438_vm1, %v437_v40, 0.0 }
  0xfb   : > { %v478_v26 = vsel %vm438_vm1, %v435_v36, 0.0 }
  0xfc   : > { %467 = vadd.xlane.f32.xlu1 %v466_v17 }
  0xfd   : > { %443 = vadd.xlane.f32.xlu0 %v442_v22 }
 0x100   : > { %461 = vadd.xlane.f32.xlu1 %v460_v27 }
 0x101   : > { %458 = vadd.xlane.f32.xlu0 %v457_v31 }
 0x104   : > { %455 = vadd.xlane.f32.xlu1 %v454_v34 }
 0x105   : > { %452 = vadd.xlane.f32.xlu0 %v451_v38 }
 0x108   : > { %479 = vadd.xlane.f32.xlu1 %v478_v26 }
 0x109   : > { %476 = vadd.xlane.f32.xlu0 %v475_v41 }
 0x10c   : > { %485 = vadd.xlane.f32.xlu1 %v484_v43 }
 0x10d   : > { %482 = vadd.xlane.f32.xlu0 %v481_v44 }
 0x17d   : > { %v447_v35 = vpop.xlane.xlu1 %446 }
 0x17e   : > { %v471_v46 = vpop.xlane.xlu0 %470  ;;  %v491_v47 = vadd.f32 %v488_v45, %v447_v35 }
 0x17f   : > { %v499_v48 = vadd.f32 %v488_v45, %v471_v46 }
 0x180   : > { %508 = vst.msk [vmem:[%s779_s12 + $0x10] sm:$0xff] %vm505_vm2, %v491_v47 }
 0x181   : > { %516 = vst.msk [vmem:[%s779_s12 + $0x50] sm:$0xff] %vm505_vm2, %v499_v48  ;;  %v450_v49 = vpop.xlane.xlu1 %449 }
 0x182   : > { %v492_v50 = vadd.f32 %v488_v45, %v450_v49  ;;  %v441_v51 = vpop.xlane.xlu0 %440 }
 0x183   : > { %v489_v52 = vadd.f32 %v488_v45, %v441_v51 }
 0x184   : > { %509 = vst.msk [vmem:[%s779_s12 + $0x18] sm:$0xff] %vm505_vm2, %v492_v50 }
 0x185   : > { %506 = vst.msk [vmem:[%s779_s12] sm:$0xff] %vm505_vm2, %v489_v52  ;;  %v474_v53 = vpop.xlane.xlu1 %473 }
 0x186   : > { %v500_v54 = vadd.f32 %v488_v45, %v474_v53  ;;  %v465_v55 = vpop.xlane.xlu0 %464 }
 0x187   : > { %v497_v56 = vadd.f32 %v488_v45, %v465_v55 }
 0x188   : > { %517 = vst.msk [vmem:[%s779_s12 + $0x58] sm:$0xff] %vm505_vm2, %v500_v54 }
 0x189   : > { %514 = vst.msk [vmem:[%s779_s12 + $0x40] sm:$0xff] %vm505_vm2, %v497_v56  ;;  %v468_v57 = vpop.xlane.xlu1 %467 }
 0x18a   : > { %v498_v58 = vadd.f32 %v488_v45, %v468_v57  ;;  %v444_v59 = vpop.xlane.xlu0 %443 }
 0x18b   : > { %v490_v60 = vadd.f32 %v488_v45, %v444_v59 }
 0x18c   : > { %515 = vst.msk [vmem:[%s779_s12 + $0x48] sm:$0xff] %vm505_vm2, %v498_v58 }
 0x18d   : > { %507 = vst.msk [vmem:[%s779_s12 + $0x8] sm:$0xff] %vm505_vm2, %v490_v60  ;;  %v462_v61 = vpop.xlane.xlu1 %461 }
 0x18e   : > { %v496_v62 = vadd.f32 %v488_v45, %v462_v61  ;;  %v459_v63 = vpop.xlane.xlu0 %458 }
 0x18f   : > { %v495_v0 = vadd.f32 %v488_v45, %v459_v63 }
 0x190   : > { %513 = vst.msk [vmem:[%s779_s12 + $0x38] sm:$0xff] %vm505_vm2, %v496_v62 }
 0x191   : > { %512 = vst.msk [vmem:[%s779_s12 + $0x30] sm:$0xff] %vm505_vm2, %v495_v0  ;;  %v456_v1 = vpop.xlane.xlu1 %455 }
 0x192   : > { %v494_v2 = vadd.f32 %v488_v45, %v456_v1  ;;  %v453_v3 = vpop.xlane.xlu0 %452 }
 0x193   : > { %v493_v4 = vadd.f32 %v488_v45, %v453_v3 }
 0x194   : > { %511 = vst.msk [vmem:[%s779_s12 + $0x28] sm:$0xff] %vm505_vm2, %v494_v2 }
 0x195   : > { %510 = vst.msk [vmem:[%s779_s12 + $0x20] sm:$0xff] %vm505_vm2, %v493_v4  ;;  %v480_v5 = vpop.xlane.xlu1 %479 }
 0x196   : > { %v502_v6 = vadd.f32 %v488_v45, %v480_v5  ;;  %v477_v7 = vpop.xlane.xlu0 %476 }
 0x197   : > { %v501_v8 = vadd.f32 %v488_v45, %v477_v7 }
 0x198   : > { %519 = vst.msk [vmem:[%s779_s12 + $0x68] sm:$0xff] %vm505_vm2, %v502_v6 }
 0x199   : > { %518 = vst.msk [vmem:[%s779_s12 + $0x60] sm:$0xff] %vm505_vm2, %v501_v8  ;;  %v486_v9 = vpop.xlane.xlu1 %485 }
 0x19a   : > { %v504_v10 = vadd.f32 %v488_v45, %v486_v9  ;;  %v483_v11 = vpop.xlane.xlu0 %482 }
 0x19b   : > { %v503_v12 = vadd.f32 %v488_v45, %v483_v11 }
 0x19c   : > { %521 = vst.msk [vmem:[%s779_s12 + $0x78] sm:$0xff] %vm505_vm2, %v504_v10 }
 0x19d   : > { %520 = vst.msk [vmem:[%s779_s12 + $0x70] sm:$0xff] %vm505_vm2, %v503_v12 }
 0x19e PF: > { %s16_s20 = sadd.s32 1, %s651_s20  }
 0x19f   : > { %p13_p4 = scmp.ge.s32.totalorder %s16_s20, 4  }
 0x1a1   :  { %15 = sbr.rel (!%p13_p4) target bundleno = 2 (0x2), region = 70 }

</bundles_post_ra>
